<compile_context>
chip_gen: v5e
topology: v5e:2x2
jax: 0.10.0
libtpu: 0.0.40
codegen_flags: <defaults>
</compile_context>

<pallas_src>
import functools
import math

import jax
import jax.numpy as jnp
from jax import lax
from jax.experimental import pallas as pl
from jax.experimental.pallas import tpu as pltpu


def _round_up(n, m):
    return ((n + m - 1) // m) * m


def _mlp_kernel(x_ref, w1_ref, b1_ref, w2_ref, b2_ref, oT_ref):
    """Two-layer MLP for one batch tile, output in transposed layout.

    x  : (bm, input_size)        natural layout, bm % 128 == 0
    w1 : (hidden, input_size)    PyTorch layout
    b1 : (hidden, 1)             f32
    w2 : (out_rows, hidden)      rows zero-padded to a multiple of 8
    b2 : (out_rows, 1)           f32
    oT : (out_rows, bm)          lane-dense, full-sublane output tile
    """
    x = x_ref[...]
    w1 = w1_ref[...]
    if x.dtype != w1.dtype:
        # In-VMEM cast (VPU); avoids an extra HBM pass in the wrapper.
        x = x.astype(w1.dtype)
    # hT = W1 @ x^T : contract dim 1 of both operands; MXU accumulates in f32.
    h = lax.dot_general(w1, x, (((1,), (1,)), ((), ())),
                        preferred_element_type=jnp.float32)        # (hidden, bm)
    h = jnp.maximum(h + b1_ref[...], 0.0)                          # f32 epilogue (VPU)
    # oT = W2 @ hT + b2
    out = jnp.dot(w2_ref[...], h.astype(w2_ref.dtype),
                  preferred_element_type=jnp.float32)              # (out_rows, bm)
    oT_ref[...] = (out + b2_ref[...]).astype(oT_ref.dtype)


@functools.partial(jax.jit, static_argnames=("compute_dtype", "block_batch"))
def lin_qnet_forward(x, w1, b1, w2, b2, *, compute_dtype=None, block_batch=None):
    """LinQNet forward.

    x  : (batch, input_size)
    w1 : (hidden, input_size), b1 : (hidden,)   -- PyTorch nn.Linear layout
    w2 : (output, hidden),     b2 : (output,)
    Returns (batch, output) in x.dtype.
    """
    batch, input_size = x.shape
    hidden_size = w1.shape[0]
    output_size = w2.shape[0]
    out_dtype = x.dtype
    if compute_dtype is None:
        compute_dtype = x.dtype

    # Batch tile: lane-dense multiple of 128.  Big tiles amortize the
    # ~0.35us/grid-step overhead (per-tile VMEM is only a few MiB even at
    # bm=8192, far under every generation's scoped limit); keep >= 2 tiles
    # when batch >= 256 so both v7x TensorCores get work.
    if block_batch is None:
        padded = _round_up(batch, 128)
        if padded >= 256:
            block_batch = min(8192, _round_up(pl.cdiv(padded, 2), 128))
        else:
            block_batch = padded
    bm = int(block_batch)
    grid_b = pl.cdiv(batch, bm)

    # Pad output rows to a sublane multiple (8) via zero-padded W2/b2 (tiny
    # XLA-side pads) so the kernel's output store is a full, unmasked tile.
    out_rows = max(8, _round_up(output_size, 8))
    pad_rows = out_rows - output_size

    w1c = w1.astype(compute_dtype)
    w2c = jnp.pad(w2.astype(compute_dtype), ((0, pad_rows), (0, 0)))
    b1c = b1.astype(jnp.float32).reshape(hidden_size, 1)
    b2c = jnp.pad(b2.astype(jnp.float32), (0, pad_rows)).reshape(out_rows, 1)

    itemsize = jnp.dtype(out_dtype).itemsize
    flops = 2 * batch * (input_size * hidden_size + hidden_size * out_rows)
    bytes_accessed = (
        batch * input_size * itemsize          # x read
        + batch * out_rows * itemsize          # output write
        + w1c.size * jnp.dtype(compute_dtype).itemsize
        + w2c.size * jnp.dtype(compute_dtype).itemsize
        + (b1c.size + b2c.size) * 4)

    oT = pl.pallas_call(
        _mlp_kernel,
        out_shape=jax.ShapeDtypeStruct((out_rows, batch), out_dtype),
        grid=(grid_b,),
        in_specs=[
            pl.BlockSpec((bm, input_size), lambda i: (i, 0)),            # x tile (natural)
            pl.BlockSpec((hidden_size, input_size), lambda i: (0, 0)),   # W1 (resident)
            pl.BlockSpec((hidden_size, 1), lambda i: (0, 0)),            # b1 (resident)
            pl.BlockSpec((out_rows, hidden_size), lambda i: (0, 0)),     # W2 (resident)
            pl.BlockSpec((out_rows, 1), lambda i: (0, 0)),               # b2 (resident)
        ],
        out_specs=pl.BlockSpec((out_rows, bm), lambda i: (0, i)),
        compiler_params=pltpu.CompilerParams(
            dimension_semantics=("parallel",)),  # batch tiles are independent
        cost_estimate=pl.CostEstimate(flops=flops, transcendentals=0,
                                      bytes_accessed=bytes_accessed),
    )(x, w1c, b1c, w2c, b2c)

    # Slice off padded rows; transpose tiny (out, batch) back to (batch, out).
    return jnp.transpose(oT[:output_size, :])


def init_lin_qnet_params(key, input_size, hidden_size, output_size,
                         dtype=jnp.float32):
    """Deterministic init matching nn.Linear's default U(-1/sqrt(fan_in), +...).

    Weights kept in PyTorch layout: (out_features, in_features).
    """
    k1, k2, k3, k4 = jax.random.split(key, 4)
    bound1 = 1.0 / math.sqrt(input_size)
    bound2 = 1.0 / math.sqrt(hidden_size)
    w1 = jax.random.uniform(k1, (hidden_size, input_size), dtype,
                            minval=-bound1, maxval=bound1)
    b1 = jax.random.uniform(k2, (hidden_size,), dtype,
                            minval=-bound1, maxval=bound1)
    w2 = jax.random.uniform(k3, (output_size, hidden_size), dtype,
                            minval=-bound2, maxval=bound2)
    b2 = jax.random.uniform(k4, (output_size,), dtype,
                            minval=-bound2, maxval=bound2)
    return w1, b1, w2, b2


def reference_forward(x, w1, b1, w2, b2):
    h = jnp.maximum(x @ w1.T + b1, 0.0)
    return h @ w2.T + b2


# TODO(synk): LinQNet.save/load (torch state_dict file I/O) has no kernel
# equivalent and is intentionally not implemented.

if __name__ == "__main__":
    key = jax.random.PRNGKey(0)
    kx, kp, kx2 = jax.random.split(key, 3)

    batch, input_size, hidden_size, output_size = 8, 16, 32, 4
    x = jax.random.normal(kx, (batch, input_size), jnp.float32)
    w1, b1, w2, b2 = init_lin_qnet_params(kp, input_size, hidden_size,
                                          output_size)
    ref = reference_forward(x, w1, b1, w2, b2)

    # f32 path (exact-ish vs reference).
    out = jax.block_until_ready(lin_qnet_forward(x, w1, b1, w2, b2))
    assert out.shape == (batch, output_size)
    assert jnp.allclose(out, ref, atol=1e-5, rtol=1e-5), "f32 mismatch vs reference"

    # bf16 compute path: weights cast in the wrapper (tiny), x cast inside the
    # kernel (no extra HBM pass), f32 accumulation/bias/ReLU. Looser tolerance.
    out_bf16 = jax.block_until_ready(
        lin_qnet_forward(x, w1, b1, w2, b2, compute_dtype=jnp.bfloat16))
    assert jnp.allclose(out_bf16, ref, atol=5e-2, rtol=5e-2), "bf16 mismatch vs reference"

    # Multi-tile grid with a ragged last tile (batch not a tile multiple),
    # exercising the pipelined/parallel batch axis and the no-pad path.
    big_batch = 300
    xb = jax.random.normal(kx2, (big_batch, input_size), jnp.float32)
    out_big = jax.block_until_ready(
        lin_qnet_forward(xb, w1, b1, w2, b2, block_batch=128))
    ref_big = reference_forward(xb, w1, b1, w2, b2)
    assert out_big.shape == (big_batch, output_size)
    assert jnp.allclose(out_big, ref_big, atol=1e-5, rtol=1e-5), "tiled mismatch"

    # Default (auto) tiling on the same ragged batch -> 2 tiles for v7x megacore.
    out_auto = jax.block_until_ready(lin_qnet_forward(xb, w1, b1, w2, b2))
    assert jnp.allclose(out_auto, ref_big, atol=1e-5, rtol=1e-5), "auto-tile mismatch"

    print("KERNEL_OK")
</pallas_src>

<mosaic_0001>
module attributes {stable_mosaic.version = 11 : i64} {
  func.func @_mlp_kernel(%arg0: i32, %arg1: memref<128x16xf32, #tpu.memory_space<vmem>>, %arg2: memref<32x16xf32, #tpu.memory_space<vmem>>, %arg3: memref<32x1xf32, #tpu.memory_space<vmem>>, %arg4: memref<8x32xf32, #tpu.memory_space<vmem>>, %arg5: memref<8x1xf32, #tpu.memory_space<vmem>>, %arg6: memref<8x128xf32, #tpu.memory_space<vmem>>) attributes {dimension_semantics = [#tpu.dimension_semantics<parallel>], iteration_bounds = array<i64: 1>, scalar_prefetch = 0 : i64, scratch_operands = 0 : i64, tpu.core_type = #tpu.core_type<tc>, window_params = [{transform_indices = @transform_0, window_bounds = array<i64: 128, 16>}, {pipeline_mode = #tpu.pipeline_mode<synchronous>, transform_indices = @transform_1, window_bounds = array<i64: 32, 16>}, {pipeline_mode = #tpu.pipeline_mode<synchronous>, transform_indices = @transform_2, window_bounds = array<i64: 32, 1>}, {pipeline_mode = #tpu.pipeline_mode<synchronous>, transform_indices = @transform_3, window_bounds = array<i64: 8, 32>}, {pipeline_mode = #tpu.pipeline_mode<synchronous>, transform_indices = @transform_4, window_bounds = array<i64: 8, 1>}, {transform_indices = @transform_5, window_bounds = array<i64: 8, 128>}]} {
    %c0 = arith.constant 0 : index
    %c0_0 = arith.constant 0 : index
    %0 = vector.load %arg1[%c0, %c0_0] : memref<128x16xf32, #tpu.memory_space<vmem>>, vector<128x16xf32>
    %c0_1 = arith.constant 0 : index
    %c0_2 = arith.constant 0 : index
    %1 = vector.load %arg2[%c0_1, %c0_2] : memref<32x16xf32, #tpu.memory_space<vmem>>, vector<32x16xf32>
    %cst = arith.constant dense<0.000000e+00> : vector<32x128xf32>
    %2 = tpu.matmul %1, %0, %cst {dimension_numbers = #tpu.dot_dimension_numbers<[1], [1], [0], [0], [0, 0, 1, 0], [], []>} : vector<32x16xf32>, vector<128x16xf32>, vector<32x128xf32> -> vector<32x128xf32>
    %c0_3 = arith.constant 0 : index
    %c0_4 = arith.constant 0 : index
    %3 = vector.load %arg3[%c0_3, %c0_4] : memref<32x1xf32, #tpu.memory_space<vmem>>, vector<32x1xf32>
    %4 = vector.broadcast %3 : vector<32x1xf32> to vector<32x128xf32>
    %5 = arith.addf %2, %4 : vector<32x128xf32>
    %cst_5 = arith.constant 0.000000e+00 : f32
    %6 = vector.broadcast %cst_5 : f32 to vector<32x128xf32>
    %7 = arith.maximumf %5, %6 : vector<32x128xf32>
    %c0_6 = arith.constant 0 : index
    %c0_7 = arith.constant 0 : index
    %8 = vector.load %arg4[%c0_6, %c0_7] : memref<8x32xf32, #tpu.memory_space<vmem>>, vector<8x32xf32>
    %cst_8 = arith.constant dense<0.000000e+00> : vector<8x128xf32>
    %9 = tpu.matmul %8, %7, %cst_8 {dimension_numbers = #tpu.dot_dimension_numbers<[1], [0], [0], [1], [0, 0, 1, 1], [], []>} : vector<8x32xf32>, vector<32x128xf32>, vector<8x128xf32> -> vector<8x128xf32>
    %c0_9 = arith.constant 0 : index
    %c0_10 = arith.constant 0 : index
    %10 = vector.load %arg5[%c0_9, %c0_10] : memref<8x1xf32, #tpu.memory_space<vmem>>, vector<8x1xf32>
    %11 = vector.broadcast %10 : vector<8x1xf32> to vector<8x128xf32>
    %12 = arith.addf %9, %11 : vector<8x128xf32>
    %c0_11 = arith.constant 0 : index
    %c0_12 = arith.constant 0 : index
    %13 = vector.load %arg6[%c0_11, %c0_12] : memref<8x128xf32, #tpu.memory_space<vmem>>, vector<8x128xf32>
    tpu.vector_store %arg6[%c0_11, %c0_12], %12 {strides = array<i32>} : memref<8x128xf32, #tpu.memory_space<vmem>>, vector<8x128xf32>,
    return
  }
  func.func @transform_0(%arg0: i32) -> (i32, i32) {
    %c0_i32 = arith.constant 0 : i32
    %c0_i32_0 = arith.constant 0 : i32
    return %arg0, %c0_i32 : i32, i32
  }
  func.func @transform_1(%arg0: i32) -> (i32, i32) {
    %c0_i32 = arith.constant 0 : i32
    %c0_i32_0 = arith.constant 0 : i32
    %c0_i32_1 = arith.constant 0 : i32
    return %c0_i32, %c0_i32_0 : i32, i32
  }
  func.func @transform_2(%arg0: i32) -> (i32, i32) {
    %c0_i32 = arith.constant 0 : i32
    %c0_i32_0 = arith.constant 0 : i32
    %c0_i32_1 = arith.constant 0 : i32
    return %c0_i32, %c0_i32_0 : i32, i32
  }
  func.func @transform_3(%arg0: i32) -> (i32, i32) {
    %c0_i32 = arith.constant 0 : i32
    %c0_i32_0 = arith.constant 0 : i32
    %c0_i32_1 = arith.constant 0 : i32
    return %c0_i32, %c0_i32_0 : i32, i32
  }
  func.func @transform_4(%arg0: i32) -> (i32, i32) {
    %c0_i32 = arith.constant 0 : i32
    %c0_i32_0 = arith.constant 0 : i32
    %c0_i32_1 = arith.constant 0 : i32
    return %c0_i32, %c0_i32_0 : i32, i32
  }
  func.func @transform_5(%arg0: i32) -> (i32, i32) {
    %c0_i32 = arith.constant 0 : i32
    %c0_i32_0 = arith.constant 0 : i32
    return %c0_i32, %arg0 : i32, i32
  }
}

</mosaic_0001>

<bundles_post_ra>
// kernel: lin_qnet_forward.1
= control target key start
LH: loop header
LB: loop body
LE: loop exit
PB: predicated region body
PF: predicated region fallthrough
CT: control target
= control target key end

     0   :  { %vm64_vm0 = vcmask 130048   ;;  %v251_v10 = vmov 0   ;;  %vm165_vm1 = vcmask 261120   ;;  %s415_s0 = inlined_call_operand.vmem [shape: f32[8,16], index: 0, kind: input, shape index: {}]   ;;  %s416_s2 = inlined_call_operand.vmem [shape: f32[32,1], index: 2, kind: input, shape index: {}]   ;;  %s417_s1 = inlined_call_operand.vmem [shape: f32[32,16], index: 1, kind: input, shape index: {}]   ;;  %s418_s4 = inlined_call_operand.vmem [shape: f32[8,1], index: 4, kind: input, shape index: {}]   ;;  %s419_s3 = inlined_call_operand.vmem [shape: f32[8,32], index: 3, kind: input, shape index: {}]   ;;  %s420_s5 = inlined_call_operand.vmem [shape: f32[8,8], index: 5, kind: output, shape index: {}]  }
   0x1   :  { %v35_v0 = vld [vmem:[%s415_s0 + $0x78] sm:$0xff]  ;;  %v34_v1 = vld [vmem:[%s415_s0 + $0x70] sm:$0xff]  ;;  %v33_v2 = vld [vmem:[%s415_s0 + $0x68] sm:$0xff]  ;;  %248 = vset.pattern.permute.xlu0 %v251_v10  ;;  %249 = vset.pattern.permute.xlu1 %v251_v10 }
   0x2   :  { %216 = vmatpush.xpose.msk.msra.mxu3 %vm64_vm0, %v35_v0  ;;  %215 = vmatpush.xpose.msk.msra.mxu2 %vm64_vm0, %v35_v0  ;;  %v32_v3 = vld [vmem:[%s415_s0 + $0x60] sm:$0xff]  ;;  %v31_v4 = vld [vmem:[%s415_s0 + $0x58] sm:$0xff]  ;;  %v30_v5 = vld [vmem:[%s415_s0 + $0x50] sm:$0xff] }
   0x3   :  { %194 = vmatpush.xpose.msk.msra.mxu0 %vm64_vm0, %v35_v0  ;;  %v29_v6 = vld [vmem:[%s415_s0 + $0x48] sm:$0xff]  ;;  %v28_v7 = vld [vmem:[%s415_s0 + $0x40] sm:$0xff]  ;;  %v27_v8 = vld [vmem:[%s415_s0 + $0x38] sm:$0xff]  ;;  %250 = vset.pattern.permute.xlu2 %v251_v10 }
   0x4   :  { %v26_v9 = vld [vmem:[%s415_s0 + $0x30] sm:$0xff]  ;;  %v25_v11 = vld [vmem:[%s415_s0 + $0x28] sm:$0xff]  ;;  %v43_v12 = vld [vmem:[%s416_s2 + $0x18] sm:$0xff] }
   0x5   :  { %v41_v13 = vld [vmem:[%s416_s2 + $0x8] sm:$0xff]  ;;  %v24_v14 = vld [vmem:[%s415_s0 + $0x20] sm:$0xff]  ;;  %61 = vperm.xlu0 %248, %v43_v12   ;;  %v23_v15 = vld [vmem:[%s415_s0 + $0x18] sm:$0xff] }
   0x6   :  { %218 = vmatpush.xpose.msk.msra.mxu3 %vm64_vm0, %v34_v1  ;;  %217 = vmatpush.xpose.msk.msra.mxu2 %vm64_vm0, %v34_v1  ;;  %v42_v16 = vld [vmem:[%s416_s2 + $0x10] sm:$0xff]  ;;  %v40_v17 = vld [vmem:[%s416_s2] sm:$0xff]  ;;  %v21_v19 = vld [vmem:[%s415_s0 + $0x8] sm:$0xff] }
   0x7   :  { %195 = vmatpush.xpose.msk.msra.mxu0 %vm64_vm0, %v34_v1  ;;  %51 = vperm.xlu1 %249, %v41_v13   ;;  %v22_v18 = vld [vmem:[%s415_s0 + $0x10] sm:$0xff]  ;;  %v20_v20 = vld [vmem:[%s415_s0] sm:$0xff]  ;;  %v37_v22 = vld [vmem:[%s417_s1 + $0x8] sm:$0xff] }
   0x8   :  { %v38_v21 = vld [vmem:[%s417_s1 + $0x10] sm:$0xff]  ;;  %v36_v23 = vld [vmem:[%s417_s1] sm:$0xff]  ;;  %v39_v24 = vld [vmem:[%s417_s1 + $0x18] sm:$0xff] }
   0x9   :  { %v159_v25 = vld [vmem:[%s418_s4] sm:$0xff] }
   0xa   :  { %220 = vmatpush.xpose.msk.msra.mxu3 %vm64_vm0, %v33_v2  ;;  %219 = vmatpush.xpose.msk.msra.mxu2 %vm64_vm0, %v33_v2  ;;  %v158_v42 = vld [vmem:[%s419_s3] sm:$0xff] }
   0xb   :  { %196 = vmatpush.xpose.msk.msra.mxu0 %vm64_vm0, %v33_v2  ;;  %162 = vperm.xlu2 %250, %v159_v25  }
   0xd   :  { %56 = vperm.xlu0 %248, %v42_v16  }
   0xe   :  { %222 = vmatpush.xpose.msk.msra.mxu3 %vm64_vm0, %v32_v3  ;;  %221 = vmatpush.xpose.msk.msra.mxu2 %vm64_vm0, %v32_v3 }
   0xf   :  { %197 = vmatpush.xpose.msk.msra.mxu0 %vm64_vm0, %v32_v3  ;;  %46 = vperm.xlu1 %249, %v40_v17  }
  0x12   :  { %224 = vmatpush.xpose.msk.msra.mxu3 %vm64_vm0, %v31_v4  ;;  %223 = vmatpush.xpose.msk.msra.mxu2 %vm64_vm0, %v31_v4 }
  0x13   :  { %198 = vmatpush.xpose.msk.msra.mxu0 %vm64_vm0, %v31_v4 }
  0x16   :  { %226 = vmatpush.xpose.msk.msra.mxu3 %vm64_vm0, %v30_v5  ;;  %225 = vmatpush.xpose.msk.msra.mxu2 %vm64_vm0, %v30_v5 }
  0x17   :  { %199 = vmatpush.xpose.msk.msra.mxu0 %vm64_vm0, %v30_v5 }
  0x1a   :  { %228 = vmatpush.xpose.msk.msra.mxu3 %vm64_vm0, %v29_v6  ;;  %227 = vmatpush.xpose.msk.msra.mxu2 %vm64_vm0, %v29_v6 }
  0x1b   :  { %200 = vmatpush.xpose.msk.msra.mxu0 %vm64_vm0, %v29_v6 }
  0x1e   :  { %230 = vmatpush.xpose.msk.msra.mxu3 %vm64_vm0, %v28_v7  ;;  %229 = vmatpush.xpose.msk.msra.mxu2 %vm64_vm0, %v28_v7 }
  0x1f   :  { %201 = vmatpush.xpose.msk.msra.mxu0 %vm64_vm0, %v28_v7 }
  0x22   :  { %232 = vmatpush.xpose.msk.msra.mxu3 %vm64_vm0, %v27_v8  ;;  %231 = vmatpush.xpose.msk.msra.mxu2 %vm64_vm0, %v27_v8 }
  0x23   :  { %202 = vmatpush.xpose.msk.msra.mxu0 %vm64_vm0, %v27_v8 }
  0x26   :  { %234 = vmatpush.xpose.msk.msra.mxu3 %vm64_vm0, %v26_v9  ;;  %233 = vmatpush.xpose.msk.msra.mxu2 %vm64_vm0, %v26_v9 }
  0x27   :  { %203 = vmatpush.xpose.msk.msra.mxu0 %vm64_vm0, %v26_v9 }
  0x2a   :  { %236 = vmatpush.xpose.msk.msra.mxu3 %vm64_vm0, %v25_v11  ;;  %235 = vmatpush.xpose.msk.msra.mxu2 %vm64_vm0, %v25_v11 }
  0x2b   :  { %204 = vmatpush.xpose.msk.msra.mxu0 %vm64_vm0, %v25_v11 }
  0x2e   :  { %238 = vmatpush.xpose.msk.msra.mxu3 %vm64_vm0, %v24_v14  ;;  %237 = vmatpush.xpose.msk.msra.mxu2 %vm64_vm0, %v24_v14 }
  0x2f   :  { %205 = vmatpush.xpose.msk.msra.mxu0 %vm64_vm0, %v24_v14 }
  0x32   :  { %240 = vmatpush.xpose.msk.msra.mxu3 %vm64_vm0, %v23_v15  ;;  %239 = vmatpush.xpose.msk.msra.mxu2 %vm64_vm0, %v23_v15 }
  0x33   :  { %206 = vmatpush.xpose.msk.msra.mxu0 %vm64_vm0, %v23_v15 }
  0x36   :  { %242 = vmatpush.xpose.msk.msra.mxu3 %vm64_vm0, %v22_v18  ;;  %241 = vmatpush.xpose.msk.msra.mxu2 %vm64_vm0, %v22_v18 }
  0x37   :  { %207 = vmatpush.xpose.msk.msra.mxu0 %vm64_vm0, %v22_v18 }
  0x3a   :  { %244 = vmatpush.xpose.msk.msra.mxu3 %vm64_vm0, %v21_v19  ;;  %243 = vmatpush.xpose.msk.msra.mxu2 %vm64_vm0, %v21_v19 }
  0x3b   :  { %208 = vmatpush.xpose.msk.msra.mxu0 %vm64_vm0, %v21_v19 }
  0x3e   :  { %246 = vmatpush.xpose.msk.msra.mxu3 %vm64_vm0, %v20_v20  ;;  %245 = vmatpush.xpose.msk.msra.mxu2 %vm64_vm0, %v20_v20 }
  0x3f   :  { %209 = vmatpush.xpose.msk.msra.mxu0 %vm64_vm0, %v20_v20 }
  0x41   :  { %212 = vmatmul.msk.f32.vlgmr.msra.gmra.mxu3 %vm64_vm0, %v38_v21  ;;  %211 = vmatmul.msk.f32.vlgmr.msra.gmra.mxu2 %vm64_vm0, %v37_v22 }
  0x42   :  { %210 = vmatmul.msk.f32.vlgmr.msra.gmra.mxu0 %vm64_vm0, %v36_v23 }
  0x49   :  { %213 = vmatmul.msk.f32.gmra.mxu3 %vm64_vm0, %v39_v24 }
  0x65   :  { %v163_v43 = vpop.permute.xlu2 %162 }
  0x77   :  { %v62_v26 = vpop.permute.xlu0 %61 }
  0x79   :  { %v52_v27 = vpop.permute.xlu1 %51 }
  0x7f   :  { %v57_v29 = vpop.permute.xlu0 %56 }
  0x81   :  { %v47_v34 = vpop.permute.xlu1 %46 }
  0xbf   :  { %v142_v35 = vpop.f32.mrf.mxu0 }
  0xc0   :  { %v143_v39 = vadd.f32 %v142_v35, %v47_v34 }
  0xc2   :  { %v154_v41 = vmax.f32 %v143_v39, 0.0 }
  0xc4   :  { %v148_v28 = vpop.f32.mrf.mxu3  ;;  %v145_v30 = vpop.f32.mrf.mxu2 }
  0xc5   :  { %v149_v32 = vadd.f32 %v148_v28, %v57_v29  ;;  %v146_v36 = vadd.f32 %v145_v30, %v52_v27 }
  0xc7   :  { %v156_v38 = vmax.f32 %v149_v32, 0.0  ;;  %v155_v40 = vmax.f32 %v146_v36, 0.0 }
  0xcc   :  { %v151_v31 = vpop.f32.mrf.mxu3 }
  0xcd   :  { %v152_v33 = vadd.f32 %v151_v31, %v62_v26 }
  0xcf   :  { %v157_v37 = vmax.f32 %v152_v33, 0.0 }
  0xd1   :  { %181 = vmatpush.msra.mxu1 %v157_v37 }
  0xd3   :  { %182 = vmatpush.msra.mxu1 %v156_v38 }
  0xd5   :  { %183 = vmatpush.msra.mxu1 %v155_v40 }
  0xd7   :  { %184 = vmatpush.msra.mxu1 %v154_v41 }
  0xd8   :  { %214 = vmatmul.msk.f32.vlgmr.msra.gmra.mxu1 %vm165_vm1, %v158_v42 }
 0x155   :  { %v186_v44 = vpop.f32.mrf.mxu1 }
 0x156   :  { %v187_v45 = vadd.f32 %v186_v44, %v163_v43 }
 0x158   :  { %189 = vst [vmem:[%s420_s5] sm:$0xff] %v187_v45 }

</bundles_post_ra>
